<compile_context>
chip_gen: v5e
topology: v5e:2x2
jax: 0.10.0
libtpu: 0.0.40
codegen_flags: <defaults>
</compile_context>

<pallas_src>
import jax
import jax.numpy as jnp
from jax.experimental import pallas as pl
from jax.experimental.pallas import tpu as pltpu

INPUT_DIM = 1024
OUTPUT_DIM = 10
_N_PAD = 128          # lane-dense padded logit width
_NEG_BIG = -1e30      # bias on padded lanes: exp underflows to exactly 0 in f32


def _round_up(x, m):
    return (x + m - 1) // m * m


# ----------------------------------------------------------------------------
# Pallas kernel: out = log_softmax(x @ w + b) along the last axis.
#   x_ref: (TM, K)  bf16      w_ref: (K, NP) bf16
#   b_ref: (1, NP)  f32       o_ref: (TM, NP) f32
# ----------------------------------------------------------------------------
def _linear_log_softmax_kernel(x_ref, w_ref, b_ref, o_ref):
    logits = jnp.dot(x_ref[...], w_ref[...],
                     preferred_element_type=jnp.float32)   # MXU bf16 -> f32 acc
    logits = logits + b_ref[...]                           # (1, NP) broadcast
    m = jnp.max(logits, axis=-1, keepdims=True)
    z = logits - m
    lse = jnp.log(jnp.sum(jnp.exp(z), axis=-1, keepdims=True))
    o_ref[...] = z - lse


def linear_log_softmax(x2, w_kn, b_1n, *, tm_max=256):
    """x2: (M, K) float; w_kn: (K, NP) bf16; b_1n: (1, NP) f32 -> (M, NP) f32."""
    M, K = x2.shape
    NP = w_kn.shape[1]
    tm = min(tm_max, _round_up(max(M, 1), 8))
    Mp = _round_up(M, tm)
    xp = jnp.pad(x2.astype(jnp.bfloat16), ((0, Mp - M), (0, 0)))
    out = pl.pallas_call(
        _linear_log_softmax_kernel,
        out_shape=jax.ShapeDtypeStruct((Mp, NP), jnp.float32),
        grid=(Mp // tm,),
        in_specs=[
            pl.BlockSpec((tm, K), lambda i: (i, 0)),
            pl.BlockSpec((K, NP), lambda i: (0, 0)),
            pl.BlockSpec((1, NP), lambda i: (0, 0)),
        ],
        out_specs=pl.BlockSpec((tm, NP), lambda i: (i, 0)),
        compiler_params=pltpu.CompilerParams(
            dimension_semantics=("parallel",)),
    )(xp, w_kn, b_1n)
    return out[:M]


# ----------------------------------------------------------------------------
# Parameters (mirrors torch.nn.Linear default init: U(-1/sqrt(fan_in), ...))
# ----------------------------------------------------------------------------
def init_params(key, input_dim=INPUT_DIM, output_dim=OUTPUT_DIM):
    kw, kb = jax.random.split(key)
    bound = 1.0 / (input_dim ** 0.5)
    w = jax.random.uniform(kw, (output_dim, input_dim), jnp.float32, -bound, bound)
    b = jax.random.uniform(kb, (output_dim,), jnp.float32, -bound, bound)
    return {"w": w, "b": b}


def prepare_params(params):
    """One-time static prep: transpose to (K, N), pad N -> 128, cast W to bf16."""
    w, b = params["w"], params["b"]
    n, k = w.shape
    np_ = max(_N_PAD, _round_up(n, 128))
    w_kn = jnp.zeros((k, np_), jnp.bfloat16).at[:, :n].set(w.T.astype(jnp.bfloat16))
    b_1n = jnp.full((1, np_), _NEG_BIG, jnp.float32).at[0, :n].set(b)
    return {"w_kn": w_kn, "b_1n": b_1n}


# ----------------------------------------------------------------------------
# Forward (mirrors MNIST_LogisticRegression.forward)
# ----------------------------------------------------------------------------
@jax.jit
def forward(prep, x):
    x2 = x.reshape(-1, INPUT_DIM)                       # == torch x.view(-1, 1024)
    out = linear_log_softmax(x2, prep["w_kn"], prep["b_1n"])
    return out[:, :OUTPUT_DIM]                          # drop padded logit lanes


if __name__ == "__main__":
    key = jax.random.PRNGKey(0)
    kp, kx = jax.random.split(key)

    params = init_params(kp)
    prep = prepare_params(params)

    # Small MNIST-like input: batch=2, 1 channel, 32x32 -> views to (2, 1024)
    x = jax.random.uniform(kx, (2, 1, 32, 32), jnp.float32)

    out = forward(prep, x)
    jax.block_until_ready(out)
    assert out.shape == (2, OUTPUT_DIM), out.shape

    # Sanity check against a pure-JAX reference (loose tol: bf16 MXU operands).
    ref = jax.nn.log_softmax(
        x.reshape(-1, INPUT_DIM) @ params["w"].T + params["b"], axis=1)
    assert jnp.allclose(out, ref, atol=5e-2), float(jnp.max(jnp.abs(out - ref)))

    print("KERNEL_OK")
</pallas_src>

<mosaic_0001>
module attributes {stable_mosaic.version = 11 : i64} {
  func.func @_linear_log_softmax_kernel(%arg0: i32, %arg1: memref<8x1024xbf16, #tpu.memory_space<vmem>>, %arg2: memref<1024x128xbf16, #tpu.memory_space<vmem>>, %arg3: memref<1x128xf32, #tpu.memory_space<vmem>>, %arg4: memref<8x128xf32, #tpu.memory_space<vmem>>) attributes {dimension_semantics = [#tpu.dimension_semantics<parallel>], iteration_bounds = array<i64: 1>, scalar_prefetch = 0 : i64, scratch_operands = 0 : i64, tpu.core_type = #tpu.core_type<tc>, window_params = [{transform_indices = @transform_0, window_bounds = array<i64: 8, 1024>}, {pipeline_mode = #tpu.pipeline_mode<synchronous>, transform_indices = @transform_1, window_bounds = array<i64: 1024, 128>}, {pipeline_mode = #tpu.pipeline_mode<synchronous>, transform_indices = @transform_2, window_bounds = array<i64: 1, 128>}, {transform_indices = @transform_3, window_bounds = array<i64: 8, 128>}]} {
    %c0 = arith.constant 0 : index
    %c0_0 = arith.constant 0 : index
    %0 = vector.load %arg1[%c0, %c0_0] : memref<8x1024xbf16, #tpu.memory_space<vmem>>, vector<8x1024xbf16>
    %c0_1 = arith.constant 0 : index
    %c0_2 = arith.constant 0 : index
    %1 = vector.load %arg2[%c0_1, %c0_2] : memref<1024x128xbf16, #tpu.memory_space<vmem>>, vector<1024x128xbf16>
    %cst = arith.constant dense<0.000000e+00> : vector<8x128xf32>
    %2 = tpu.matmul %0, %1, %cst {dimension_numbers = #tpu.dot_dimension_numbers<[1], [0], [0], [1], [0, 0, 1, 1], [], []>} : vector<8x1024xbf16>, vector<1024x128xbf16>, vector<8x128xf32> -> vector<8x128xf32>
    %c0_3 = arith.constant 0 : index
    %c0_4 = arith.constant 0 : index
    %3 = vector.load %arg3[%c0_3, %c0_4] : memref<1x128xf32, #tpu.memory_space<vmem>>, vector<1x128xf32>
    %4 = vector.broadcast %3 : vector<1x128xf32> to vector<8x128xf32>
    %5 = arith.addf %2, %4 : vector<8x128xf32>
    %cst_5 = arith.constant dense<0xFF800000> : vector<8xf32>
    %6 = vector.multi_reduction <maximumf>, %5, %cst_5 [1] : vector<8x128xf32> to vector<8xf32>
    %7 = vector.shape_cast %6 : vector<8xf32> to vector<8x1xf32>
    %8 = vector.broadcast %7 : vector<8x1xf32> to vector<8x128xf32>
    %9 = arith.subf %5, %8 : vector<8x128xf32>
    %10 = math.exp %9 : vector<8x128xf32>
    %cst_6 = arith.constant dense<0.000000e+00> : vector<8xf32>
    %11 = vector.multi_reduction <add>, %10, %cst_6 [1] : vector<8x128xf32> to vector<8xf32>
    %12 = vector.shape_cast %11 : vector<8xf32> to vector<8x1xf32>
    %13 = math.log %12 : vector<8x1xf32>
    %14 = vector.broadcast %13 : vector<8x1xf32> to vector<8x128xf32>
    %15 = arith.subf %9, %14 : vector<8x128xf32>
    %c0_7 = arith.constant 0 : index
    %c0_8 = arith.constant 0 : index
    %16 = vector.load %arg4[%c0_7, %c0_8] : memref<8x128xf32, #tpu.memory_space<vmem>>, vector<8x128xf32>
    tpu.vector_store %arg4[%c0_7, %c0_8], %15 {strides = array<i32>} : memref<8x128xf32, #tpu.memory_space<vmem>>, vector<8x128xf32>,
    return
  }
  func.func @transform_0(%arg0: i32) -> (i32, i32) {
    %c0_i32 = arith.constant 0 : i32
    %c0_i32_0 = arith.constant 0 : i32
    return %arg0, %c0_i32 : i32, i32
  }
  func.func @transform_1(%arg0: i32) -> (i32, i32) {
    %c0_i32 = arith.constant 0 : i32
    %c0_i32_0 = arith.constant 0 : i32
    %c0_i32_1 = arith.constant 0 : i32
    return %c0_i32, %c0_i32_0 : i32, i32
  }
  func.func @transform_2(%arg0: i32) -> (i32, i32) {
    %c0_i32 = arith.constant 0 : i32
    %c0_i32_0 = arith.constant 0 : i32
    %c0_i32_1 = arith.constant 0 : i32
    return %c0_i32, %c0_i32_0 : i32, i32
  }
  func.func @transform_3(%arg0: i32) -> (i32, i32) {
    %c0_i32 = arith.constant 0 : i32
    %c0_i32_0 = arith.constant 0 : i32
    return %arg0, %c0_i32 : i32, i32
  }
}

</mosaic_0001>

<bundles_post_ra>
// kernel: forward.1
= control target key start
LH: loop header
LB: loop body
LE: loop exit
PB: predicated region body
PF: predicated region fallthrough
CT: control target
= control target key end

     0   :  { %8 = vsyncpa [#allocation3], 0  ;;  %s1052_s15 = smov [#allocation2]   ;;  %s1053_s17 = smov 64   ;;  %s1096_s0 = inlined_call_operand.vmem [shape: bf16[8,1024], index: 0, kind: input, shape index: {}]   ;;  %s1097_s1 = inlined_call_operand.hbm [shape: bf16[1024,128], index: 1, kind: input, shape index: {}]   ;;  %s1098_s2 = inlined_call_operand.vmem [shape: f32[1,128], index: 2, kind: input, shape index: {}]   ;;  %s1099_s3 = inlined_call_operand.vmem [shape: f32[8,128], index: 3, kind: output, shape index: {}]  }
   0x1   :  { %s15_s14 = sshll.u32 %s1097_s1, 4  ;;  %s17_s16 = sshll.u32 %s1052_s15, 4  ;;  %s16_s14 = int_to_ptr.hbm [resolvable:$true] %s15_s14  ;;  %s18_s16 = int_to_ptr.vmem [resolvable:$true] %s17_s16 }
   0x2   :  { %s1054_s18 = smov 4  }
   0x3   :  { %23 = dma.hbm_to_vmem [thread:$0]  %s16_s14, 8192, %s18_s16, [#allocation3], %s1053_s17, %s1053_s17, %s1054_s18  }
   0x4   :  { %1050 = dma.done.wait [#allocation3], 8192  }
   0x5   :  { %1051 = vsyncadd [#allocation3], 4294959104  ;;  %v961_v0 = vld [vmem:[#allocation2 + $0x38] sm:$0xff]  ;;  %v960_v4 = vld [vmem:[#allocation2 + $0x30] sm:$0xff] }
   0x6   :  { %v969_v1 = vld [vmem:[#allocation2 + $0x78] sm:$0xff]  ;;  %578 = vmatpush.bf16.msra.mxu0 %v961_v0  ;;  %v968_v5 = vld [vmem:[#allocation2 + $0x70] sm:$0xff]  ;;  %v959_v8 = vld [vmem:[#allocation2 + $0x28] sm:$0xff] }
   0x7   :  { %v977_v2 = vld [vmem:[#allocation2 + $0xb8] sm:$0xff]  ;;  %591 = vmatpush.bf16.msra.mxu1 %v969_v1  ;;  %v976_v6 = vld [vmem:[#allocation2 + $0xb0] sm:$0xff]  ;;  %v967_v9 = vld [vmem:[#allocation2 + $0x68] sm:$0xff] }
   0x8   :  { %v985_v3 = vld [vmem:[#allocation2 + $0xf8] sm:$0xff]  ;;  %604 = vmatpush.bf16.msra.mxu2 %v977_v2  ;;  %v984_v7 = vld [vmem:[#allocation2 + $0xf0] sm:$0xff]  ;;  %v975_v10 = vld [vmem:[#allocation2 + $0xa8] sm:$0xff] }
   0x9   :  { %617 = vmatpush.bf16.msra.mxu3 %v985_v3  ;;  %v983_v11 = vld [vmem:[#allocation2 + $0xe8] sm:$0xff]  ;;  %v958_v12 = vld [vmem:[#allocation2 + $0x20] sm:$0xff]  ;;  %v957_v16 = vld [vmem:[#allocation2 + $0x18] sm:$0xff] }
   0xa   :  { %579 = vmatpush.bf16.msra.mxu0 %v960_v4  ;;  %v966_v13 = vld [vmem:[#allocation2 + $0x60] sm:$0xff]  ;;  %v965_v17 = vld [vmem:[#allocation2 + $0x58] sm:$0xff]  ;;  %v956_v20 = vld [vmem:[#allocation2 + $0x10] sm:$0xff] }
   0xb   :  { %592 = vmatpush.bf16.msra.mxu1 %v968_v5  ;;  %v974_v14 = vld [vmem:[#allocation2 + $0xa0] sm:$0xff]  ;;  %v973_v18 = vld [vmem:[#allocation2 + $0x98] sm:$0xff]  ;;  %v964_v21 = vld [vmem:[#allocation2 + $0x50] sm:$0xff] }
   0xc   :  { %605 = vmatpush.bf16.msra.mxu2 %v976_v6  ;;  %v982_v15 = vld [vmem:[#allocation2 + $0xe0] sm:$0xff]  ;;  %v981_v19 = vld [vmem:[#allocation2 + $0xd8] sm:$0xff]  ;;  %v972_v22 = vld [vmem:[#allocation2 + $0x90] sm:$0xff] }
   0xd   :  { %618 = vmatpush.bf16.msra.mxu3 %v984_v7  ;;  %v980_v23 = vld [vmem:[#allocation2 + $0xd0] sm:$0xff]  ;;  %v955_v24 = vld [vmem:[#allocation2 + $0x8] sm:$0xff]  ;;  %v30_v29 = vld [vmem:[%s1096_s0] sm:$0xff] }
   0xe   :  { %580 = vmatpush.bf16.msra.mxu0 %v959_v8  ;;  %v963_v25 = vld [vmem:[#allocation2 + $0x48] sm:$0xff]  ;;  %v954_v30 = vld [vmem:[#allocation2] sm:$0xff]  ;;  %v170_v33 = vunpack.c.l.b16 %v30_v29  ;;  %v171_v37 = vunpack.c.h.b16 %v30_v29  ;;  %v993_v38 = vld [vmem:[#allocation2 + $0x138] sm:$0xff] }
   0xf   :  { %593 = vmatpush.bf16.msra.mxu1 %v967_v9  ;;  %v971_v26 = vld [vmem:[#allocation2 + $0x88] sm:$0xff]  ;;  %v962_v31 = vld [vmem:[#allocation2 + $0x40] sm:$0xff]  ;;  %v1001_v39 = vld [vmem:[#allocation2 + $0x178] sm:$0xff] }
  0x10   :  { %606 = vmatpush.bf16.msra.mxu2 %v975_v10  ;;  %v979_v27 = vld [vmem:[#allocation2 + $0xc8] sm:$0xff]  ;;  %v970_v34 = vld [vmem:[#allocation2 + $0x80] sm:$0xff]  ;;  %v1009_v40 = vld [vmem:[#allocation2 + $0x1b8] sm:$0xff]  ;;  %v178_v43 = vpack.c.b16 %v170_v33, %v170_v33  ;;  %v179_v45 = vpack.c.b16 %v171_v37, %v171_v37 }
  0x11   :  { %619 = vmatpush.bf16.msra.mxu3 %v983_v11  ;;  %v31_v28 = vld [vmem:[%s1096_s0 + $0x8] sm:$0xff]  ;;  %v978_v35 = vld [vmem:[#allocation2 + $0xc0] sm:$0xff]  ;;  %v1017_v41 = vld [vmem:[#allocation2 + $0x1f8] sm:$0xff] }
  0x12   :  { %581 = vmatpush.bf16.msra.mxu0 %v958_v12  ;;  %v172_v32 = vunpack.c.l.b16 %v31_v28  ;;  %v173_v36 = vunpack.c.h.b16 %v31_v28  ;;  %v992_v46 = vld [vmem:[#allocation2 + $0x130] sm:$0xff]  ;;  %v991_v50 = vld [vmem:[#allocation2 + $0x128] sm:$0xff]  ;;  %v990_v54 = vld [vmem:[#allocation2 + $0x120] sm:$0xff] }
  0x13   :  { %594 = vmatpush.bf16.msra.mxu1 %v966_v13  ;;  %v1000_v47 = vld [vmem:[#allocation2 + $0x170] sm:$0xff]  ;;  %v999_v51 = vld [vmem:[#allocation2 + $0x168] sm:$0xff]  ;;  %v998_v55 = vld [vmem:[#allocation2 + $0x160] sm:$0xff] }
  0x14   :  { %607 = vmatpush.bf16.msra.mxu2 %v974_v14  ;;  %v180_v42 = vpack.c.b16 %v172_v32, %v172_v32  ;;  %v181_v44 = vpack.c.b16 %v173_v36, %v173_v36  ;;  %v1008_v48 = vld [vmem:[#allocation2 + $0x1b0] sm:$0xff]  ;;  %v1007_v52 = vld [vmem:[#allocation2 + $0x1a8] sm:$0xff]  ;;  %v1006_v56 = vld [vmem:[#allocation2 + $0x1a0] sm:$0xff] }
  0x15   :  { %620 = vmatpush.bf16.msra.mxu3 %v982_v15  ;;  %v1016_v49 = vld [vmem:[#allocation2 + $0x1f0] sm:$0xff]  ;;  %v1015_v53 = vld [vmem:[#allocation2 + $0x1e8] sm:$0xff]  ;;  %v1014_v57 = vld [vmem:[#allocation2 + $0x1e0] sm:$0xff] }
  0x16   :  { %582 = vmatpush.bf16.msra.mxu0 %v957_v16  ;;  %v989_v58 = vld [vmem:[#allocation2 + $0x118] sm:$0xff]  ;;  %v988_v62 = vld [vmem:[#allocation2 + $0x110] sm:$0xff]  ;;  %v987_v2 = vld [vmem:[#allocation2 + $0x108] sm:$0xff] }
  0x17   :  { %595 = vmatpush.bf16.msra.mxu1 %v965_v17  ;;  %v997_v59 = vld [vmem:[#allocation2 + $0x158] sm:$0xff]  ;;  %v996_v63 = vld [vmem:[#allocation2 + $0x150] sm:$0xff]  ;;  %v995_v3 = vld [vmem:[#allocation2 + $0x148] sm:$0xff] }
  0x18   :  { %608 = vmatpush.bf16.msra.mxu2 %v973_v18  ;;  %v1005_v60 = vld [vmem:[#allocation2 + $0x198] sm:$0xff]  ;;  %v1004_v0 = vld [vmem:[#allocation2 + $0x190] sm:$0xff]  ;;  %v1003_v5 = vld [vmem:[#allocation2 + $0x188] sm:$0xff] }
  0x19   :  { %621 = vmatpush.bf16.msra.mxu3 %v981_v19  ;;  %v1013_v61 = vld [vmem:[#allocation2 + $0x1d8] sm:$0xff]  ;;  %v1012_v1 = vld [vmem:[#allocation2 + $0x1d0] sm:$0xff]  ;;  %v1011_v6 = vld [vmem:[#allocation2 + $0x1c8] sm:$0xff] }
  0x1a   :  { %583 = vmatpush.bf16.msra.mxu0 %v956_v20  ;;  %v32_v4 = vld [vmem:[%s1096_s0 + $0x10] sm:$0xff]  ;;  %v33_v7 = vld [vmem:[%s1096_s0 + $0x18] sm:$0xff]  ;;  %v986_v10 = vld [vmem:[#allocation2 + $0x100] sm:$0xff] }
  0x1b   :  { %596 = vmatpush.bf16.msra.mxu1 %v964_v21  ;;  %v174_v8 = vunpack.c.l.b16 %v32_v4  ;;  %v175_v9 = vunpack.c.h.b16 %v32_v4  ;;  %v994_v11 = vld [vmem:[#allocation2 + $0x140] sm:$0xff]  ;;  %v176_v12 = vunpack.c.l.b16 %v33_v7  ;;  %v177_v13 = vunpack.c.h.b16 %v33_v7 }
  0x1c   :  { %609 = vmatpush.bf16.msra.mxu2 %v972_v22  ;;  %v1002_v14 = vld [vmem:[#allocation2 + $0x180] sm:$0xff] }
  0x1d   :  { %622 = vmatpush.bf16.msra.mxu3 %v980_v23  ;;  %v1010_v15 = vld [vmem:[#allocation2 + $0x1c0] sm:$0xff]  ;;  %v182_v16 = vpack.c.b16 %v174_v8, %v174_v8  ;;  %v183_v17 = vpack.c.b16 %v175_v9, %v175_v9  ;;  %v184_v18 = vpack.c.b16 %v176_v12, %v176_v12  ;;  %v185_v19 = vpack.c.b16 %v177_v13, %v177_v13 }
  0x1e   :  { %584 = vmatpush.bf16.msra.mxu0 %v955_v24 }
  0x1f   :  { %597 = vmatpush.bf16.msra.mxu1 %v963_v25 }
  0x20   :  { %610 = vmatpush.bf16.msra.mxu2 %v971_v26  ;;  %v1021_v26 = vld [vmem:[%s1098_s2] ss:$0 sm:$0xff] }
  0x21   :  { %623 = vmatpush.bf16.msra.mxu3 %v979_v27 }
  0x22   :  { %585 = vmatpush.bf16.msra.mxu0 %v954_v30 }
  0x23   :  { %598 = vmatpush.bf16.msra.mxu1 %v962_v31 }
  0x24   :  { %611 = vmatpush.bf16.msra.mxu2 %v970_v34 }
  0x25   :  { %624 = vmatpush.bf16.msra.mxu3 %v978_v35  ;;  %586 = vmatmul.bf16.vlgmr.msra.gmra.mxu0 %v178_v43 }
  0x26   :  { %630 = vmatpush.bf16.msrb.mxu0 %v993_v38  ;;  %599 = vmatmul.bf16.vlgmr.msra.gmra.mxu1 %v179_v45 }
  0x27   :  { %643 = vmatpush.bf16.msrb.mxu1 %v1001_v39  ;;  %612 = vmatmul.bf16.vlgmr.msra.gmra.mxu2 %v180_v42 }
  0x28   :  { %656 = vmatpush.bf16.msrb.mxu2 %v1009_v40  ;;  %625 = vmatmul.bf16.vlgmr.msra.gmra.mxu3 %v181_v44 }
  0x29   :  { %669 = vmatpush.bf16.msrb.mxu3 %v1017_v41 }
  0x2a   :  { %631 = vmatpush.bf16.msrb.mxu0 %v992_v46 }
  0x2b   :  { %644 = vmatpush.bf16.msrb.mxu1 %v1000_v47 }
  0x2c   :  { %657 = vmatpush.bf16.msrb.mxu2 %v1008_v48 }
  0x2d   :  { %670 = vmatpush.bf16.msrb.mxu3 %v1016_v49 }
  0x2e   :  { %632 = vmatpush.bf16.msrb.mxu0 %v991_v50 }
  0x2f   :  { %645 = vmatpush.bf16.msrb.mxu1 %v999_v51 }
  0x30   :  { %658 = vmatpush.bf16.msrb.mxu2 %v1007_v52 }
  0x31   :  { %671 = vmatpush.bf16.msrb.mxu3 %v1015_v53 }
  0x32   :  { %633 = vmatpush.bf16.msrb.mxu0 %v990_v54 }
  0x33   :  { %646 = vmatpush.bf16.msrb.mxu1 %v998_v55 }
  0x34   :  { %659 = vmatpush.bf16.msrb.mxu2 %v1006_v56 }
  0x35   :  { %672 = vmatpush.bf16.msrb.mxu3 %v1014_v57 }
  0x36   :  { %634 = vmatpush.bf16.msrb.mxu0 %v989_v58 }
  0x37   :  { %647 = vmatpush.bf16.msrb.mxu1 %v997_v59 }
  0x38   :  { %660 = vmatpush.bf16.msrb.mxu2 %v1005_v60 }
  0x39   :  { %673 = vmatpush.bf16.msrb.mxu3 %v1013_v61 }
  0x3a   :  { %635 = vmatpush.bf16.msrb.mxu0 %v988_v62 }
  0x3b   :  { %648 = vmatpush.bf16.msrb.mxu1 %v996_v63 }
  0x3c   :  { %661 = vmatpush.bf16.msrb.mxu2 %v1004_v0 }
  0x3d   :  { %674 = vmatpush.bf16.msrb.mxu3 %v1012_v1 }
  0x3e   :  { %636 = vmatpush.bf16.msrb.mxu0 %v987_v2 }
  0x3f   :  { %649 = vmatpush.bf16.msrb.mxu1 %v995_v3 }
  0x40   :  { %662 = vmatpush.bf16.msrb.mxu2 %v1003_v5 }
  0x41   :  { %675 = vmatpush.bf16.msrb.mxu3 %v1011_v6 }
  0x42   :  { %637 = vmatpush.bf16.msrb.mxu0 %v986_v10 }
  0x43   :  { %650 = vmatpush.bf16.msrb.mxu1 %v994_v11 }
  0x44   :  { %663 = vmatpush.bf16.msrb.mxu2 %v1002_v14 }
  0x45   :  { %676 = vmatpush.bf16.msrb.mxu3 %v1010_v15  ;;  %638 = vmatmul.bf16.vlgmr.msrb.gmra.mxu0 %v182_v16 }
  0x46   :  { %651 = vmatmul.bf16.vlgmr.msrb.gmra.mxu1 %v183_v17 }
  0x47   :  { %664 = vmatmul.bf16.vlgmr.msrb.gmra.mxu2 %v184_v18 }
  0x48   :  { %677 = vmatmul.bf16.vlgmr.msrb.gmra.mxu3 %v185_v19 }
  0xa2   :  { %v587_v20 = vpop.f32.mrf.mxu0 }
  0xa3   :  { %v600_v21 = vpop.f32.mrf.mxu1  ;;  %v588_v29 = vadd.f32 %v1021_v26, %v587_v20 }
  0xa5   :  { %v601_v30 = vadd.f32 %v600_v21, %v588_v29 }
  0xaa   :  { %v613_v22 = vpop.f32.mrf.mxu2  ;;  %v589_v24 = vpop.f32.mrf.mxu0 }
  0xab   :  { %v626_v23 = vpop.f32.mrf.mxu3  ;;  %v602_v25 = vpop.f32.mrf.mxu1  ;;  %v614_v31 = vadd.f32 %v613_v22, %v601_v30 }
  0xad   :  { %v627_v32 = vadd.f32 %v626_v23, %v614_v31 }
  0xb2   :  { %v615_v27 = vpop.f32.mrf.mxu2 }
  0xb3   :  { %v628_v28 = vpop.f32.mrf.mxu3 }
  0xc2   :  { %v639_v33 = vpop.f32.mrf.mxu0 }
  0xc3   :  { %v652_v34 = vpop.f32.mrf.mxu1  ;;  %v640_v35 = vadd.f32 %v639_v33, %v627_v32 }
  0xc5   :  { %v653_v36 = vadd.f32 %v652_v34, %v640_v35 }
  0xca   :  { %v665_v37 = vpop.f32.mrf.mxu2  ;;  %v641_v40 = vpop.f32.mrf.mxu0 }
  0xcb   :  { %v678_v38 = vpop.f32.mrf.mxu3  ;;  %v666_v39 = vadd.f32 %v665_v37, %v653_v36  ;;  %v654_v41 = vpop.f32.mrf.mxu1 }
  0xcd   :  { %v679_v42 = vadd.f32 %v678_v38, %v666_v39 }
  0xcf   :  { %682 = vmax.xlane.f32.xlu0 %v679_v42 }
  0xd2   :  { %v667_v43 = vpop.f32.mrf.mxu2 }
  0xd3   :  { %v680_v44 = vpop.f32.mrf.mxu3 }
 0x142   :  { %v683_v45 = vpop.xlane.xlu0 %682 }
 0x143   :  { %v684_v46 = vsub.f32 %v679_v42, %v683_v45 }
 0x145   :  { %v685_v47 = vmul.f32 1.442695, %v684_v46 }
 0x147   :  { %1022 = vpow2.f32 %v685_v47 }
 0x14d   :  { %v1023_v48 = vpop.eup %1022 }
 0x14e   :  { %687 = vadd.xlane.f32.xlu0 %v1023_v48 }
 0x1c1   :  { %v688_v49 = vpop.xlane.xlu0 %687 }
 0x1c2   :  { %1024 = vlog2.f32 %v688_v49 }
 0x1c8   :  { %v1025_v50 = vpop.eup %1024 }
 0x1c9   :  { %v690_v51 = vmul.f32 0.6931472, %v1025_v50 }
 0x1cb   :  { %v691_v52 = vsub.f32 %v684_v46, %v690_v51 }
 0x1cd   :  { %692 = vst [vmem:[%s1099_s3] sm:$0xff] %v691_v52 }
 0x1ce   :  { %697 = vsyncpa [#allocation3], 1 }

</bundles_post_ra>
